<compile_context>
chip_gen: v6e
topology: v6e:2x2x1
jax: 0.10.0
libtpu: 0.0.40
codegen_flags: <defaults>
</compile_context>

<pallas_src>
import functools

import jax
import jax.numpy as jnp
from jax.experimental import pallas as pl
from jax.experimental.pallas import tpu as pltpu

LANES = 128
SUBLANES = 8


def _bce_elementwise(x, t):
    x = x.astype(jnp.float32)
    t = t.astype(jnp.float32)
    # Numerically stable BCE with logits:
    #   loss = max(x, 0) - x * t + log(1 + exp(-|x|))
    return jnp.maximum(x, 0.0) - x * t + jnp.log1p(jnp.exp(-jnp.abs(x)))


def _bce_partial_sum_kernel(x_ref, t_ref, o_ref, *, full_rows, tm, tiles_per_core,
                            exact):
    c = pl.program_id(0)   # TensorCore ("parallel") axis
    i = pl.program_id(1)   # streaming ("arbitrary") axis

    @pl.when(i == 0)
    def _():
        o_ref[...] = jnp.zeros_like(o_ref)

    loss = _bce_elementwise(x_ref[...], t_ref[...])  # f32 math in-register

    def _accum(vals):
        # (tm,128) -> (tm//8, 8, 128) keeps the native (8,128) tile as the minor dims
        # (layout no-op); the axis-0 sum is plain full-vreg VALU adds -- no XLU
        # cross-sublane reduce, no masked sub-tile accumulator store.
        o_ref[...] += vals.reshape(-1, SUBLANES, LANES).sum(axis=0)

    if exact:
        # Every tile of every core is fully in bounds: unmasked fast path everywhere.
        _accum(loss)
    else:
        tile_idx = c * tiles_per_core + i        # logical (unclamped) tile index
        row0 = tile_idx * tm

        @pl.when(row0 + tm <= full_rows)
        def _():
            _accum(loss)

        @pl.when(row0 + tm > full_rows)
        def _():
            # Overhanging / logically-empty trailing tile.  The input index_map keeps
            # the DMA in bounds, but rows past full_rows are padding garbage or
            # duplicates of earlier rows; zero them by LOGICAL row index.  Keep the
            # select (NOT multiply-by-mask): garbage through exp() can be Inf/NaN and
            # NaN * 0 would poison the sum.
            row = jax.lax.broadcasted_iota(jnp.int32, loss.shape, 0)
            _accum(jnp.where(row0 + row < full_rows, loss, 0.0))


def _num_tensorcores():
    # v7x has 2 TensorCores per chip; v5e/v6e have 1.  Best-effort detection: the
    # fallback (1) is always correct, just single-core on v7x.
    try:
        kind = jax.devices()[0].device_kind.lower()
    except Exception:
        return 1
    return 2 if "v7" in kind else 1


def _make_in_spec(block_shape, index_map, buffers):
    if buffers == 2:
        return pl.BlockSpec(block_shape, index_map)
    try:
        return pl.BlockSpec(block_shape, index_map, pipeline_mode=pl.Buffered(buffers))
    except TypeError:
        # Older Pallas without pipeline_mode on BlockSpec: default double-buffering.
        return pl.BlockSpec(block_shape, index_map)


def bce_with_logits_loss(inputs, targets, *, tm=4096):
    """Mean BCE-with-logits over all elements (weight=None, size_average=True).

    Inputs/targets may be any floating dtype; the log/exp math runs in f32
    in-register.  For best performance keep them in bf16 at the call site (the
    kernel is HBM-bandwidth bound).  Per-lane f32 partials accumulate in a
    different order than PyTorch's reduction; expect ~1e-6 relative differences
    for very large element counts.  `tm` (row tile) can be swept 4096-8192.
    """
    assert inputs.shape == targets.shape
    total = inputs.size

    x = inputs.reshape(-1)    # bitcast for contiguous inputs, no HBM copy
    t = targets.reshape(-1)

    full_rows = total // LANES
    if total % LANES != 0 or full_rows < SUBLANES:
        # Non-128-divisible (or tiny) sizes: slicing off the 128-divisible head in
        # front of a pallas_call would materialize a near-full-size HBM copy (slices
        # feeding a custom call don't fuse into it).  A single fused XLA map-reduce
        # pass is simpler and strictly cheaper, so fall back to it.
        # TODO(synk): in-kernel ragged handling via a 1-D BlockSpec + lane mask if
        # non-128-divisible sizes ever show up on the hot path.
        return jnp.sum(_bce_elementwise(x, t)) / total

    x = x.reshape(full_rows, LANES)   # bitcast (row-major), lane-dense view
    t = t.reshape(full_rows, LANES)

    # Row tile: as large as requested, clamped to the array and to a multiple of 8.
    # Any ragged last tile is handled by the in-kernel logical-row mask.
    tm_eff = min(tm, full_rows)
    tm_eff -= tm_eff % SUBLANES
    total_tiles = pl.cdiv(full_rows, tm_eff)

    num_cores = _num_tensorcores()
    tiles_per_core = pl.cdiv(total_tiles, num_cores)
    exact = num_cores * tiles_per_core * tm_eff == full_rows

    if num_cores == 1:
        in_idx = lambda c, i: (i, 0)
        buffers = 2
    else:
        def in_idx(c, i):
            # Clamp so a core's trailing (logically empty) tiles never issue an
            # out-of-range DMA; the kernel zeroes them by logical row index.
            return (jnp.minimum(c * tiles_per_core + i, total_tiles - 1), 0)
        buffers = 3  # v7x: short per-block DMAs -> 3rd input buffer hides issue latency

    in_spec = _make_in_spec((tm_eff, LANES), in_idx, buffers)

    n = full_rows * LANES
    cost = pl.CostEstimate(
        flops=6 * n,
        transcendentals=2 * n,
        bytes_accessed=n * (inputs.dtype.itemsize + targets.dtype.itemsize)
        + num_cores * SUBLANES * LANES * 4,
    )

    partial = pl.pallas_call(
        functools.partial(
            _bce_partial_sum_kernel,
            full_rows=full_rows, tm=tm_eff,
            tiles_per_core=tiles_per_core, exact=exact),
        out_shape=jax.ShapeDtypeStruct((num_cores * SUBLANES, LANES), jnp.float32),
        grid_spec=pltpu.PrefetchScalarGridSpec(
            num_scalar_prefetch=0,
            grid=(num_cores, tiles_per_core),
            in_specs=[in_spec, in_spec],
            out_specs=pl.BlockSpec((SUBLANES, LANES), lambda c, i: (c, 0)),
        ),
        compiler_params=pltpu.CompilerParams(
            dimension_semantics=("parallel", "arbitrary"),
        ),
        cost_estimate=cost,
    )(x, t)

    # Final (num_cores*8, 128) -> scalar reduce + mean is trivial; do it in JAX.
    return jnp.sum(partial) / total


if __name__ == "__main__":
    key = jax.random.PRNGKey(0)
    k_in, k_tgt = jax.random.split(key)

    # Small NCHW-like logits/targets pair (segmentation style).
    shape = (2, 4, 16, 16)
    inputs = jax.random.normal(k_in, shape, dtype=jnp.float32)
    targets = jax.random.bernoulli(k_tgt, 0.5, shape).astype(jnp.float32)

    loss_fn = jax.jit(bce_with_logits_loss)
    loss = jax.block_until_ready(loss_fn(inputs, targets))
    ref = jnp.mean(_bce_elementwise(inputs, targets))
    assert jnp.allclose(loss, ref, rtol=1e-5, atol=1e-6), (loss, ref)

    # Exercise the masked last-tile path (full_rows=200, tm=16 -> ragged grid) and the
    # bf16 input contract (kernel upcasts in-register).
    shape2 = (2, 100, 128)
    k1, k2 = jax.random.split(k_in)
    x2 = jax.random.normal(k1, shape2, dtype=jnp.bfloat16)
    t2 = jax.random.bernoulli(k2, 0.5, shape2).astype(jnp.bfloat16)
    loss2 = jax.block_until_ready(
        jax.jit(functools.partial(bce_with_logits_loss, tm=16))(x2, t2))
    ref2 = jnp.mean(_bce_elementwise(x2, t2))
    assert jnp.allclose(loss2, ref2, rtol=1e-4, atol=1e-4), (loss2, ref2)

    # Exercise the non-128-divisible fallback path.
    shape3 = (3, 5, 7)
    x3 = jax.random.normal(k2, shape3, dtype=jnp.float32)
    t3 = jax.random.bernoulli(k1, 0.5, shape3).astype(jnp.float32)
    loss3 = jax.block_until_ready(jax.jit(bce_with_logits_loss)(x3, t3))
    ref3 = jnp.mean(_bce_elementwise(x3, t3))
    assert jnp.allclose(loss3, ref3, rtol=1e-5, atol=1e-6), (loss3, ref3)

    print("KERNEL_OK")
</pallas_src>

<mosaic_0001>
module attributes {stable_mosaic.version = 11 : i64} {
  func.func @_bce_partial_sum_kernel(%arg0: i32, %arg1: i32, %arg2: memref<16x128xf32, #tpu.memory_space<vmem>>, %arg3: memref<16x128xf32, #tpu.memory_space<vmem>>, %arg4: memref<8x128xf32, #tpu.memory_space<vmem>>) attributes {dimension_semantics = [#tpu.dimension_semantics<parallel>, #tpu.dimension_semantics<arbitrary>], iteration_bounds = array<i64: 1, 1>, scalar_prefetch = 0 : i64, scratch_operands = 0 : i64, tpu.core_type = #tpu.core_type<tc>, window_params = [{transform_indices = @transform_0, window_bounds = array<i64: 16, 128>}, {transform_indices = @transform_1, window_bounds = array<i64: 16, 128>}, {transform_indices = @transform_2, window_bounds = array<i64: 8, 128>}]} {
    %c0_i32 = arith.constant 0 : i32
    %0 = arith.cmpi eq, %arg1, %c0_i32 : i32
    %1 = arith.extui %0 : i1 to i32
    %c0_i32_0 = arith.constant 0 : i32
    %2 = arith.cmpi ne, %1, %c0_i32_0 : i32
    scf.if %2 {
      %cst_10 = arith.constant 0.000000e+00 : f32
      %20 = vector.broadcast %cst_10 : f32 to vector<8x128xf32>
      %c0_11 = arith.constant 0 : index
      %c0_12 = arith.constant 0 : index
      %21 = vector.load %arg4[%c0_11, %c0_12] : memref<8x128xf32, #tpu.memory_space<vmem>>, vector<8x128xf32>
      tpu.vector_store %arg4[%c0_11, %c0_12], %20 {strides = array<i32>} : memref<8x128xf32, #tpu.memory_space<vmem>>, vector<8x128xf32>,
    } else {
    }
    %c0 = arith.constant 0 : index
    %c0_1 = arith.constant 0 : index
    %3 = vector.load %arg2[%c0, %c0_1] : memref<16x128xf32, #tpu.memory_space<vmem>>, vector<16x128xf32>
    %c0_2 = arith.constant 0 : index
    %c0_3 = arith.constant 0 : index
    %4 = vector.load %arg3[%c0_2, %c0_3] : memref<16x128xf32, #tpu.memory_space<vmem>>, vector<16x128xf32>
    %cst = arith.constant 0.000000e+00 : f32
    %5 = vector.broadcast %cst : f32 to vector<16x128xf32>
    %6 = arith.maximumf %3, %5 : vector<16x128xf32>
    %7 = arith.mulf %3, %4 : vector<16x128xf32>
    %8 = arith.subf %6, %7 : vector<16x128xf32>
    %9 = math.absf %3 : vector<16x128xf32>
    %cst_4 = arith.constant 0.000000e+00 : f32
    %10 = vector.broadcast %cst_4 : f32 to vector<16x128xf32>
    %11 = arith.subf %10, %9 : vector<16x128xf32>
    %12 = math.exp %11 : vector<16x128xf32>
    %13 = math.log1p %12 : vector<16x128xf32>
    %14 = arith.addf %8, %13 : vector<16x128xf32>
    %c0_5 = arith.constant 0 : index
    %c0_6 = arith.constant 0 : index
    %15 = vector.load %arg4[%c0_5, %c0_6] : memref<8x128xf32, #tpu.memory_space<vmem>>, vector<8x128xf32>
    %16 = vector.shape_cast %14 : vector<16x128xf32> to vector<2x8x128xf32>
    %cst_7 = arith.constant dense<0.000000e+00> : vector<8x128xf32>
    %17 = vector.multi_reduction <add>, %16, %cst_7 [0] : vector<2x8x128xf32> to vector<8x128xf32>
    %18 = arith.addf %15, %17 : vector<8x128xf32>
    %c0_8 = arith.constant 0 : index
    %c0_9 = arith.constant 0 : index
    %19 = vector.load %arg4[%c0_8, %c0_9] : memref<8x128xf32, #tpu.memory_space<vmem>>, vector<8x128xf32>
    tpu.vector_store %arg4[%c0_8, %c0_9], %18 {strides = array<i32>} : memref<8x128xf32, #tpu.memory_space<vmem>>, vector<8x128xf32>,
    return
  }
  func.func @transform_0(%arg0: i32, %arg1: i32) -> (i32, i32) {
    %c0_i32 = arith.constant 0 : i32
    %c0_i32_0 = arith.constant 0 : i32
    return %arg1, %c0_i32 : i32, i32
  }
  func.func @transform_1(%arg0: i32, %arg1: i32) -> (i32, i32) {
    %c0_i32 = arith.constant 0 : i32
    %c0_i32_0 = arith.constant 0 : i32
    return %arg1, %c0_i32 : i32, i32
  }
  func.func @transform_2(%arg0: i32, %arg1: i32) -> (i32, i32) {
    %c0_i32 = arith.constant 0 : i32
    %c0_i32_0 = arith.constant 0 : i32
    return %arg0, %c0_i32 : i32, i32
  }
}

</mosaic_0001>

<bundles_post_ra>
// kernel: bce_with_logits_loss.1
= control target key start
LH: loop header
LB: loop body
LE: loop exit
PB: predicated region body
PF: predicated region fallthrough
CT: control target
= control target key end

     0   :  { %s101_s0 = inlined_call_operand.vmem [shape: f32[16,128], index: 0, kind: input, shape index: {}]   ;;  %s102_s1 = inlined_call_operand.vmem [shape: f32[16,128], index: 1, kind: input, shape index: {}]   ;;  %s103_s2 = inlined_call_operand.vmem [shape: f32[8,128], index: 2, kind: output, shape index: {}]  }
   0x1   :  { %v16_v0 = vld [vmem:[%s101_s0] sm:$0xff]  ;;  %v17_v1 = vld [vmem:[%s101_s0 + $0x8] sm:$0xff] }
   0x2   :  { %v26_v2 = vand.u32 2147483647, %v16_v0  ;;  %v27_v3 = vand.u32 2147483647, %v17_v1  ;;  %v18_v14 = vld [vmem:[%s102_s1] sm:$0xff]  ;;  %v19_v15 = vld [vmem:[%s102_s1 + $0x8] sm:$0xff] }
   0x3   :  { %v20_v17 = vmax.f32 %v16_v0, 0.0  ;;  %v22_v18 = vmul.f32 %v18_v14, %v16_v0  ;;  %v21_v21 = vmax.f32 %v17_v1, 0.0  ;;  %v23_v22 = vmul.f32 %v19_v15, %v17_v1 }
   0x4   :  { %v28_v4 = vsub.f32 0.0, %v26_v2  ;;  %v29_v5 = vsub.f32 0.0, %v27_v3 }
   0x5   :  { %v24_v26 = vsub.f32 %v20_v17, %v22_v18  ;;  %v25_v29 = vsub.f32 %v21_v21, %v23_v22 }
   0x6   :  { %v30_v6 = vmul.f32 1.442695, %v28_v4  ;;  %v32_v7 = vmul.f32 1.442695, %v29_v5 }
   0x8   :  { %63 = vpow2.f32 %v30_v6 }
   0x9   :  { %65 = vpow2.f32 %v32_v7 }
  0x15   :  { %v64_v8 = vpop.eup %63 }
  0x16   :  { %v66_v9 = vpop.eup %65  ;;  %v34_v10 = vadd.f32 1.0, %v64_v8  ;;  %v37_v12 = vmul.f32 -0.5, %v64_v8  ;;  %v40_v19 = vand.u32 2147483647, %v64_v8 }
  0x17   :  { %v43_v11 = vadd.f32 1.0, %v66_v9  ;;  %v46_v13 = vmul.f32 -0.5, %v66_v9  ;;  %v49_v23 = vand.u32 2147483647, %v66_v9 }
  0x18   :  { %67 = vlog2.f32 %v34_v10  ;;  %v38_v16 = vadd.f32 1.0, %v37_v12  ;;  %vm41_vm0 = vcmp.lt.f32.partialorder %v40_v19, 0.0004427343 }
  0x19   :  { %69 = vlog2.f32 %v43_v11  ;;  %v47_v20 = vadd.f32 1.0, %v46_v13  ;;  %vm50_vm1 = vcmp.lt.f32.partialorder %v49_v23, 0.0004427343 }
  0x1a   :  { %v39_v24 = vmul.f32 %v64_v8, %v38_v16 }
  0x1b   :  { %v48_v27 = vmul.f32 %v66_v9, %v47_v20 }
  0x25   :  { %v68_v25 = vpop.eup %67 }
  0x26   :  { %v70_v28 = vpop.eup %69  ;;  %v36_v30 = vmul.f32 0.6931472, %v68_v25 }
  0x27   :  { %v45_v31 = vmul.f32 0.6931472, %v70_v28 }
  0x28   :  { %v42_v32 = vsel %vm41_vm0, %v39_v24, %v36_v30 }
  0x29   :  { %v51_v33 = vsel %vm50_vm1, %v48_v27, %v45_v31  ;;  %v52_v34 = vadd.f32 %v42_v32, %v24_v26 }
  0x2a   :  { %v53_v35 = vadd.f32 %v51_v33, %v25_v29 }
  0x2c   :  { %v55_v36 = vadd.f32 %v53_v35, %v52_v34 }
  0x2e   :  { %57 = vst [vmem:[%s103_s2] sm:$0xff] %v55_v36 }

</bundles_post_ra>
